<compile_context>
chip_gen: v7x
topology: tpu7x:2x2x1
jax: 0.10.0
libtpu: 0.0.40
codegen_flags: <defaults>
</compile_context>

<pallas_src>
import math

import jax
import jax.numpy as jnp
from jax.experimental import pallas as pl
from jax.experimental.pallas import tpu as pltpu


def _round_up(x: int, m: int) -> int:
    return ((x + m - 1) // m) * m


def gcn_kernel(x_ref, wt_ref, b_ref, adj_ref, out_ref, acc_ref):
    """Grid point (i, k): acc[i] += adj[i, k] @ (x[k] @ W_t + b)."""
    k = pl.program_id(1)

    # support_k = x[k_tile] @ W^T + b   (bf16 MXU inputs, f32 accumulation;
    # bias belongs to `support`, so adding it per k-slice is exact — it is
    # NOT re-added to the output per k-step).
    support = (
        jnp.dot(x_ref[...], wt_ref[...], preferred_element_type=jnp.float32)
        + b_ref[...]
    )

    # adj[i_tile, k_tile] @ support_k   (f32 MXU accumulation)
    contrib = jnp.dot(
        adj_ref[...],
        support.astype(adj_ref.dtype),
        preferred_element_type=jnp.float32,
    )

    @pl.when(k == 0)
    def _init():
        # First k-step writes directly — saves a zero-fill + add pass.
        acc_ref[...] = contrib

    @pl.when(k != 0)
    def _accum():
        acc_ref[...] += contrib

    @pl.when(k == pl.num_programs(1) - 1)
    def _finalize():
        out_ref[...] = acc_ref[...].astype(out_ref.dtype)


def graph_convolution(
    x,
    adj,
    weight_t,
    bias,
    *,
    tile_m: int = 1024,
    tile_k: int = 1024,
    compute_dtype=jnp.bfloat16,
    out_dtype=jnp.float32,
):
    """x: [N, F_in], adj: [N, N] dense, weight_t: [F_in, F_out], bias: [F_out]."""
    assert tile_m % 128 == 0 and tile_k % 128 == 0, "tiles must be lane-aligned"
    N, f_in = x.shape
    f_out = weight_t.shape[1]

    # TODO(synk): if F_out > F_in, compute (adj @ x) @ W_t instead so the N×N
    # contraction runs against the smaller feature dim. Here F_out <= F_in.

    # ---- lane-dense / tile-friendly padding -------------------------------
    f_in_p = _round_up(f_in, 128)
    f_out_p = _round_up(f_out, 128)
    n128 = _round_up(N, 128)
    tm = min(tile_m, n128)   # row tile (sublane dim of adj/out, ≥ mult of 8)
    tk = min(tile_k, n128)   # contraction tile (lane dim of adj, mult of 128)
    # Both tiles are multiples of 128, so this lcm never explodes: for small
    # graphs n_p == round_up(N, 128); for large graphs n_p == round_up(N, tile).
    n_p = _round_up(N, (tm * tk) // math.gcd(tm, tk))

    # Zero padding is semantically inert: padded adj cols/rows are zero, so
    # padded support rows (which equal the bias) never reach the output, and
    # padded output rows/cols are sliced away below.
    x_p = (
        jnp.zeros((n_p, f_in_p), compute_dtype)
        .at[:N, :f_in].set(x.astype(compute_dtype))
    )
    wt_p = (
        jnp.zeros((f_in_p, f_out_p), compute_dtype)
        .at[:f_in, :f_out].set(weight_t.astype(compute_dtype))
    )
    b_p = (
        jnp.zeros((1, f_out_p), jnp.float32)
        .at[0, :f_out].set(bias.astype(jnp.float32))
    )
    adj_p = (
        jnp.zeros((n_p, n_p), compute_dtype)
        .at[:N, :N].set(adj.astype(compute_dtype))
    )

    grid = (n_p // tm, n_p // tk)  # reduction axis (k) last

    itemsize_c = jnp.dtype(compute_dtype).itemsize
    cost = pl.CostEstimate(
        # support recompute happens once per row-tile, not once total
        flops=2 * grid[0] * n_p * f_in_p * f_out_p + 2 * n_p * n_p * f_out_p,
        transcendentals=0,
        bytes_accessed=(
            adj_p.size * itemsize_c
            + grid[0] * x_p.size * itemsize_c
            + wt_p.size * itemsize_c
            + n_p * f_out_p * jnp.dtype(out_dtype).itemsize
        ),
    )

    out_p = pl.pallas_call(
        gcn_kernel,
        out_shape=jax.ShapeDtypeStruct((n_p, f_out_p), out_dtype),
        grid=grid,
        in_specs=[
            pl.BlockSpec((tk, f_in_p), lambda i, k: (k, 0)),       # x k-slice
            pl.BlockSpec((f_in_p, f_out_p), lambda i, k: (0, 0)),  # W^T (resident)
            pl.BlockSpec((1, f_out_p), lambda i, k: (0, 0)),       # bias (resident)
            pl.BlockSpec((tm, tk), lambda i, k: (i, k)),           # adj tile
        ],
        out_specs=pl.BlockSpec((tm, f_out_p), lambda i, k: (i, 0)),
        scratch_shapes=[pltpu.VMEM((tm, f_out_p), jnp.float32)],   # f32 accumulator
        compiler_params=pltpu.CompilerParams(
            # row tiles parallel (v7x 2 TCs), contraction axis arbitrary (last)
            dimension_semantics=("parallel", "arbitrary"),
            # explicit VMEM budget with headroom for v7x's 64 MiB/TC
            vmem_limit_bytes=48 * 1024 * 1024,
        ),
        cost_estimate=cost,
    )(x_p, wt_p, b_p, adj_p)

    return out_p[:N, :f_out]


if __name__ == "__main__":
    key = jax.random.PRNGKey(0)
    k_x, k_adj, k_w, k_b = jax.random.split(key, 4)

    N = 16            # number of graph nodes
    in_features = 32
    out_features = 16

    # Deterministic parameter init mirroring the module's init():
    #   stdv = 1/sqrt(in_features); W ~ U(-stdv, stdv); bias ~ U(-stdv, stdv)
    stdv = 1.0 / math.sqrt(in_features)
    weight = jax.random.uniform(
        k_w, (out_features, in_features), jnp.float32, -stdv, stdv
    )
    bias = jax.random.uniform(k_b, (out_features,), jnp.float32, -stdv, stdv)

    x = jax.random.normal(k_x, (N, in_features), jnp.float32)
    # Dense (row-normalized) adjacency standing in for the sparse matrix.
    adj_raw = (jax.random.uniform(k_adj, (N, N)) > 0.7).astype(jnp.float32)
    adj = adj_raw + jnp.eye(N, dtype=jnp.float32)
    adj = adj / jnp.maximum(adj.sum(axis=1, keepdims=True), 1.0)

    weight_t = weight.T  # [F_in, F_out]

    out = graph_convolution(x, adj, weight_t, bias)
    out = jax.block_until_ready(out)

    # Pure-JAX reference with the same bf16 operand rounding the kernel uses
    # (f32 accumulation), so tolerances stay tight.
    x_bf = x.astype(jnp.bfloat16).astype(jnp.float32)
    wt_bf = weight_t.astype(jnp.bfloat16).astype(jnp.float32)
    adj_bf = adj.astype(jnp.bfloat16).astype(jnp.float32)
    support_ref = (x_bf @ wt_bf + bias[None, :]).astype(jnp.bfloat16).astype(jnp.float32)
    ref = adj_bf @ support_ref

    assert out.shape == (N, out_features)
    assert jnp.allclose(out, ref, atol=2e-2, rtol=2e-2), "mismatch vs reference"

    print("KERNEL_OK")
</pallas_src>

<mosaic_0001>
module attributes {stable_mosaic.version = 11 : i64} {
  func.func @gcn_kernel(%arg0: i32, %arg1: i32, %arg2: memref<128x128xbf16, #tpu.memory_space<vmem>>, %arg3: memref<128x128xbf16, #tpu.memory_space<vmem>>, %arg4: memref<1x128xf32, #tpu.memory_space<vmem>>, %arg5: memref<128x128xbf16, #tpu.memory_space<vmem>>, %arg6: memref<128x128xf32, #tpu.memory_space<vmem>>, %arg7: memref<128x128xf32, #tpu.memory_space<vmem>>) attributes {dimension_semantics = [#tpu.dimension_semantics<parallel>, #tpu.dimension_semantics<arbitrary>], iteration_bounds = array<i64: 1, 1>, scalar_prefetch = 0 : i64, scratch_operands = 1 : i64, tpu.core_type = #tpu.core_type<tc>, window_params = [{transform_indices = @transform_0, window_bounds = array<i64: 128, 128>}, {pipeline_mode = #tpu.pipeline_mode<synchronous>, transform_indices = @transform_1, window_bounds = array<i64: 128, 128>}, {pipeline_mode = #tpu.pipeline_mode<synchronous>, transform_indices = @transform_2, window_bounds = array<i64: 1, 128>}, {transform_indices = @transform_3, window_bounds = array<i64: 128, 128>}, {transform_indices = @transform_4, window_bounds = array<i64: 128, 128>}]} {
    %c0 = arith.constant 0 : index
    %c0_0 = arith.constant 0 : index
    %0 = vector.load %arg2[%c0, %c0_0] : memref<128x128xbf16, #tpu.memory_space<vmem>>, vector<128x128xbf16>
    %c0_1 = arith.constant 0 : index
    %c0_2 = arith.constant 0 : index
    %1 = vector.load %arg3[%c0_1, %c0_2] : memref<128x128xbf16, #tpu.memory_space<vmem>>, vector<128x128xbf16>
    %cst = arith.constant dense<0.000000e+00> : vector<128x128xf32>
    %2 = tpu.matmul %0, %1, %cst {dimension_numbers = #tpu.dot_dimension_numbers<[1], [0], [0], [1], [0, 0, 1, 1], [], []>} : vector<128x128xbf16>, vector<128x128xbf16>, vector<128x128xf32> -> vector<128x128xf32>
    %c0_3 = arith.constant 0 : index
    %c0_4 = arith.constant 0 : index
    %3 = vector.load %arg4[%c0_3, %c0_4] : memref<1x128xf32, #tpu.memory_space<vmem>>, vector<1x128xf32>
    %4 = vector.broadcast %3 : vector<1x128xf32> to vector<128x128xf32>
    %5 = arith.addf %2, %4 : vector<128x128xf32>
    %c0_5 = arith.constant 0 : index
    %c0_6 = arith.constant 0 : index
    %6 = vector.load %arg5[%c0_5, %c0_6] : memref<128x128xbf16, #tpu.memory_space<vmem>>, vector<128x128xbf16>
    %7 = arith.truncf %5 : vector<128x128xf32> to vector<128x128xbf16>
    %cst_7 = arith.constant dense<0.000000e+00> : vector<128x128xf32>
    %8 = tpu.matmul %6, %7, %cst_7 {dimension_numbers = #tpu.dot_dimension_numbers<[1], [0], [0], [1], [0, 0, 1, 1], [], []>} : vector<128x128xbf16>, vector<128x128xbf16>, vector<128x128xf32> -> vector<128x128xf32>
    %c0_i32 = arith.constant 0 : i32
    %9 = arith.cmpi eq, %arg1, %c0_i32 : i32
    %10 = arith.extui %9 : i1 to i32
    %c0_i32_8 = arith.constant 0 : i32
    %11 = arith.cmpi ne, %10, %c0_i32_8 : i32
    scf.if %11 {
      %c0_13 = arith.constant 0 : index
      %c0_14 = arith.constant 0 : index
      %18 = vector.load %arg7[%c0_13, %c0_14] : memref<128x128xf32, #tpu.memory_space<vmem>>, vector<128x128xf32>
      tpu.vector_store %arg7[%c0_13, %c0_14], %8 {strides = array<i32>} : memref<128x128xf32, #tpu.memory_space<vmem>>, vector<128x128xf32>,
    } else {
    }
    %c0_i32_9 = arith.constant 0 : i32
    %12 = arith.cmpi ne, %arg1, %c0_i32_9 : i32
    %13 = arith.extui %12 : i1 to i32
    %c0_i32_10 = arith.constant 0 : i32
    %14 = arith.cmpi ne, %13, %c0_i32_10 : i32
    scf.if %14 {
      %c0_13 = arith.constant 0 : index
      %c0_14 = arith.constant 0 : index
      %18 = vector.load %arg7[%c0_13, %c0_14] : memref<128x128xf32, #tpu.memory_space<vmem>>, vector<128x128xf32>
      %19 = arith.addf %18, %8 : vector<128x128xf32>
      %c0_15 = arith.constant 0 : index
      %c0_16 = arith.constant 0 : index
      %20 = vector.load %arg7[%c0_15, %c0_16] : memref<128x128xf32, #tpu.memory_space<vmem>>, vector<128x128xf32>
      tpu.vector_store %arg7[%c0_15, %c0_16], %19 {strides = array<i32>} : memref<128x128xf32, #tpu.memory_space<vmem>>, vector<128x128xf32>,
    } else {
    }
    %c0_i32_11 = arith.constant 0 : i32
    %15 = arith.cmpi eq, %arg1, %c0_i32_11 : i32
    %16 = arith.extui %15 : i1 to i32
    %c0_i32_12 = arith.constant 0 : i32
    %17 = arith.cmpi ne, %16, %c0_i32_12 : i32
    scf.if %17 {
      %c0_13 = arith.constant 0 : index
      %c0_14 = arith.constant 0 : index
      %18 = vector.load %arg7[%c0_13, %c0_14] : memref<128x128xf32, #tpu.memory_space<vmem>>, vector<128x128xf32>
      %c0_15 = arith.constant 0 : index
      %c0_16 = arith.constant 0 : index
      %19 = vector.load %arg6[%c0_15, %c0_16] : memref<128x128xf32, #tpu.memory_space<vmem>>, vector<128x128xf32>
      tpu.vector_store %arg6[%c0_15, %c0_16], %18 {strides = array<i32>} : memref<128x128xf32, #tpu.memory_space<vmem>>, vector<128x128xf32>,
    } else {
    }
    return
  }
  func.func @transform_0(%arg0: i32, %arg1: i32) -> (i32, i32) {
    %c0_i32 = arith.constant 0 : i32
    %c0_i32_0 = arith.constant 0 : i32
    return %arg1, %c0_i32 : i32, i32
  }
  func.func @transform_1(%arg0: i32, %arg1: i32) -> (i32, i32) {
    %c0_i32 = arith.constant 0 : i32
    %c0_i32_0 = arith.constant 0 : i32
    %c0_i32_1 = arith.constant 0 : i32
    return %c0_i32, %c0_i32_0 : i32, i32
  }
  func.func @transform_2(%arg0: i32, %arg1: i32) -> (i32, i32) {
    %c0_i32 = arith.constant 0 : i32
    %c0_i32_0 = arith.constant 0 : i32
    %c0_i32_1 = arith.constant 0 : i32
    return %c0_i32, %c0_i32_0 : i32, i32
  }
  func.func @transform_3(%arg0: i32, %arg1: i32) -> (i32, i32) {
    %c0_i32 = arith.constant 0 : i32
    return %arg0, %arg1 : i32, i32
  }
  func.func @transform_4(%arg0: i32, %arg1: i32) -> (i32, i32) {
    %c0_i32 = arith.constant 0 : i32
    %c0_i32_0 = arith.constant 0 : i32
    return %arg0, %c0_i32 : i32, i32
  }
}

</mosaic_0001>

<bundles_post_ra>
// kernel: tpu_custom_call.1
= control target key start
LH: loop header
LB: loop body
LE: loop exit
PB: predicated region body
PF: predicated region fallthrough
CT: control target
= control target key end

     0   :  { %9 = vsyncpa [#allocation4], 0  ;;  %s933_s0 = inlined_call_operand.hbm [shape: bf16[128,128], index: 0, kind: input, shape index: {}]   ;;  %s934_s1 = inlined_call_operand.hbm [shape: bf16[128,128], index: 1, kind: input, shape index: {}]   ;;  %s935_s2 = inlined_call_operand.vmem [shape: f32[1,128], index: 2, kind: input, shape index: {}]   ;;  %s936_s3 = inlined_call_operand.hbm [shape: bf16[128,128], index: 3, kind: input, shape index: {}]   ;;  %s937_s4 = inlined_call_operand.hbm [shape: f32[128,128], index: 4, kind: output, shape index: {}]  }
   0x1   :  { %10 = vsyncpa [#allocation7], 0 }
   0x2   :  { %11 = vsyncpa [#allocation5], 0  ;;  %s833_s15 = smov [#allocation6]   ;;  %s834_s17 = smov [#allocation3]  }
   0x3   :  { %s29_s16 = sshll.u32 %s833_s15, 4  ;;  %s17_s18 = sshll.u32 %s834_s17, 4  ;;  %s30_s16 = int_to_ptr.vmem [resolvable:$true] %s29_s16  ;;  %s866_s18 = int_to_ptr.vmem [resolvable:$true] %s17_s18 }
   0x4   :  { %s739_s21 = scalar_lea.hbm %s934_s1, 1024 }
   0x5   :  { %p740_p0 = scmp.ne.s32.totalorder %s934_s1, %s739_s21  ;;  %p743_p1 = scmp.lt.u32.totalorder %s739_s21, %s934_s1 }
   0x7   :  { %p745_p2 = pnand %p743_p1, %p740_p0 }
   0x9   :  { %748 = shalt.err (!%p745_p2)
}
   0xa   :  { %s749_s26 = scalar_lea.vmem %s30_s16, 1024  ;;  %p754_p4 = scmp.lt.s32.totalorder %s30_s16, %s30_s16 }
   0xb   :  { %p750_p3 = scmp.ne.s32.totalorder %s30_s16, %s749_s26  ;;  %p755_p5 = scmp.lt.s32.totalorder %s749_s26, %s749_s26 }
   0xd   :  { %p756_p6 = por %p755_p5, %p754_p4 }
   0xf   :  { %p757_p7 = pnand %p756_p6, %p750_p3 }
  0x11   :  { %760 = shalt.err (!%p757_p7)
}
  0x12   :  { %s835_s27 = smov 64   ;;  %s836_s28 = smov 4  }
  0x13   :  { %35 = dma.hbm_to_vmem [thread:$0]  %s934_s1, 1024, %s30_s16, [#allocation7], %s835_s27, %s835_s27, %s836_s28  }
  0x14   :  { %s761_s7 = scalar_lea.hbm %s933_s0, 1024 }
  0x15   :  { %p762_p8 = scmp.ne.s32.totalorder %s933_s0, %s761_s7  ;;  %p765_p9 = scmp.lt.u32.totalorder %s761_s7, %s933_s0 }
  0x17   :  { %p767_p10 = pnand %p765_p9, %p762_p8 }
  0x19   :  { %770 = shalt.err (!%p767_p10)
}
  0x1a   :  { %s771_s12 = scalar_lea.vmem %s866_s18, 1024  ;;  %p776_p12 = scmp.lt.s32.totalorder %s866_s18, %s866_s18 }
  0x1b   :  { %p772_p11 = scmp.ne.s32.totalorder %s866_s18, %s771_s12  ;;  %p777_p13 = scmp.lt.s32.totalorder %s771_s12, %s771_s12 }
  0x1d   :  { %p778_p0 = por %p777_p13, %p776_p12 }
  0x1f   :  { %p779_p1 = pnand %p778_p0, %p772_p11 }
  0x21   :  { %782 = shalt.err (!%p779_p1)
}
  0x22   :  { %23 = dma.hbm_to_vmem [thread:$0]  %s933_s0, 1024, %s866_s18, [#allocation4], %s835_s27, %s835_s27, %s836_s28  }
  0x23   :  { %s837_s14 = smov [#allocation8]   ;;  %s783_s19 = scalar_lea.hbm %s936_s3, 1024 }
  0x24   :  { %s43_s15 = sshll.u32 %s837_s14, 4  ;;  %p784_p2 = scmp.ne.s32.totalorder %s936_s3, %s783_s19  ;;  %s44_s15 = int_to_ptr.vmem [resolvable:$true] %s43_s15 }
  0x25   :  { %p787_p3 = scmp.lt.u32.totalorder %s783_s19, %s936_s3 }
  0x27   :  { %p789_p4 = pnand %p787_p3, %p784_p2 }
  0x29   :  { %792 = shalt.err (!%p789_p4)
}
  0x2a   :  { %s793_s24 = scalar_lea.vmem %s44_s15, 1024  ;;  %p798_p6 = scmp.lt.s32.totalorder %s44_s15, %s44_s15 }
  0x2b   :  { %p794_p5 = scmp.ne.s32.totalorder %s44_s15, %s793_s24  ;;  %p799_p7 = scmp.lt.s32.totalorder %s793_s24, %s793_s24 }
  0x2d   :  { %p800_p8 = por %p799_p7, %p798_p6 }
  0x2f   :  { %p801_p9 = pnand %p800_p8, %p794_p5 }
  0x31   :  { %804 = shalt.err (!%p801_p9)
}
  0x32   :  { %49 = dma.hbm_to_vmem [thread:$0]  %s936_s3, 1024, %s44_s15, [#allocation7], %s835_s27, %s835_s27, %s836_s28  }
  0x33   :  { %827 = dma.done.wait [#allocation4], 1024  }
  0x34   :  { %828 = vsyncadd [#allocation4], 4294966272 }
  0x35   :  { %829 = dma.done.wait [#allocation7], 2048  }
  0x36   :  { %830 = vsyncadd [#allocation7], 4294965248  ;;  %v715_v0 = vld [vmem:[#allocation6] sm:$0xff]   ;;  %v716_v1 = vld [vmem:[#allocation6 + $0x8] sm:$0xff]  }
  0x37   :  { %643 = vmatprep.subr.bf16.mxu0 %v715_v0  ;;  %v717_v2 = vld [vmem:[#allocation6 + $0x10] sm:$0xff]   ;;  %v718_v3 = vld [vmem:[#allocation6 + $0x18] sm:$0xff]   ;;  %v723_v4 = vld [vmem:[#allocation3] sm:$0xff]  }
  0x38   :  { %644 = vmatpush3.bf16.msra.mxu0 %v715_v0  ;;  %659 = vmatprep.mubr.bf16.mxu0 %v723_v4  ;;  %v719_v5 = vld [vmem:[#allocation6 + $0x20] sm:$0xff]   ;;  %v720_v6 = vld [vmem:[#allocation6 + $0x28] sm:$0xff]   ;;  %v721_v7 = vld [vmem:[#allocation6 + $0x30] sm:$0xff]  }
  0x39   :  { %645 = vmatprep.subr.bf16.mxu0 %v716_v1  ;;  %v722_v8 = vld [vmem:[#allocation6 + $0x38] sm:$0xff]   ;;  %v724_v9 = vld [vmem:[#allocation3 + $0x8] sm:$0xff]   ;;  %v725_v10 = vld [vmem:[#allocation3 + $0x10] sm:$0xff]  }
  0x3a   :  { %v726_v11 = vld [vmem:[#allocation3 + $0x18] sm:$0xff]   ;;  %v727_v12 = vld [vmem:[#allocation3 + $0x20] sm:$0xff]   ;;  %v728_v13 = vld [vmem:[#allocation3 + $0x28] sm:$0xff]  }
  0x3b   :  { %v729_v14 = vld [vmem:[#allocation3 + $0x30] sm:$0xff]   ;;  %v730_v15 = vld [vmem:[#allocation3 + $0x38] sm:$0xff]   ;;  %v731_v16 = vld [vmem:[#allocation8] sm:$0xff]  }
  0x3c   :  { %646 = vmatpush3.bf16.msra.mxu0 %v716_v1  ;;  %691 = vmatprep.mubr.bf16.mxu1 %v731_v16  ;;  %v586_v18 = vld [vmem:[%s935_s2] ss:$0 sm:$0xff]  ;;  %v732_v58 = vld [vmem:[#allocation8 + $0x8] sm:$0xff]   ;;  %v733_v59 = vld [vmem:[#allocation8 + $0x10] sm:$0xff]   ;;  %s838_s2 = smov [#allocation9]  }
  0x3d   :  { %647 = vmatprep.subr.bf16.mxu0 %v717_v2  ;;  %v734_v60 = vld [vmem:[#allocation8 + $0x18] sm:$0xff]   ;;  %v735_v61 = vld [vmem:[#allocation8 + $0x20] sm:$0xff]   ;;  %v736_v62 = vld [vmem:[#allocation8 + $0x28] sm:$0xff]   ;;  %s573_s26 = sshll.u32 %s838_s2, 4  ;;  %s574_s26 = int_to_ptr.vmem [resolvable:$true] %s573_s26 }
  0x3e   :  { %v737_v63 = vld [vmem:[#allocation8 + $0x30] sm:$0xff]   ;;  %v738_v0 = vld [vmem:[#allocation8 + $0x38] sm:$0xff]   ;;  %s805_s27 = scalar_lea.vmem %s574_s26, 2048  ;;  %p810_p11 = scmp.lt.s32.totalorder %s574_s26, %s574_s26 }
  0x3f   :  { %p806_p10 = scmp.ne.s32.totalorder %s574_s26, %s805_s27  ;;  %p811_p12 = scmp.lt.s32.totalorder %s805_s27, %s805_s27 }
  0x40   :  { %648 = vmatpush3.bf16.msra.mxu0 %v717_v2 }
  0x41   :  { %649 = vmatprep.subr.bf16.mxu0 %v718_v3  ;;  %p812_p13 = por %p811_p12, %p810_p11 }
  0x43   :  { %p813_p0 = pnand %p812_p13, %p806_p10 }
  0x44   :  { %650 = vmatpush3.bf16.msra.mxu0 %v718_v3 }
  0x45   :  { %651 = vmatprep.subr.bf16.mxu0 %v719_v5 }
  0x48   :  { %652 = vmatpush3.bf16.msra.mxu0 %v719_v5 }
  0x49   :  { %653 = vmatprep.subr.bf16.mxu0 %v720_v6 }
  0x4c   :  { %654 = vmatpush3.bf16.msra.mxu0 %v720_v6 }
  0x4d   :  { %655 = vmatprep.subr.bf16.mxu0 %v721_v7 }
  0x50   :  { %656 = vmatpush3.bf16.msra.mxu0 %v721_v7 }
  0x51   :  { %657 = vmatprep.subr.bf16.mxu0 %v722_v8 }
  0x54   :  { %658 = vmatpush3.bf16.msra.mxu0 %v722_v8 }
  0x57   :  { %660 = vmatmul.mubr.bf16.vlgmr.msra.gmra.mrb[0].mxu0 %v724_v9 }
  0x58   :  { %663 = vmatprep.mubr.bf16.mxu0 %v725_v10 }
  0x5f   :  { %664 = vmatmul.mubr.bf16.gmra.mrb[4].mxu0 %v726_v11 }
  0x60   :  { %667 = vmatprep.mubr.bf16.mxu0 %v727_v12 }
  0x67   :  { %668 = vmatmul.mubr.bf16.gmra.mrb[8].mxu0 %v728_v13 }
  0x68   :  { %671 = vmatprep.mubr.bf16.mxu0 %v729_v14 }
  0x6f   :  { %672 = vmatmul.mubr.bf16.gmra.mrb[12].mxu0 %v730_v15 }
 0x12a   :  { %v661_v17 = vpop.f32.mrb[0].mxu0 }
 0x12b   :  { %v229_v19 = vpop.f32.mrb[1].mxu0  ;;  %v238_v21 = vadd.f32 %v661_v17, %v586_v18 }
 0x12c   :  { %v662_v20 = vpop.f32.mrb[2].mxu0  ;;  %v230_v24 = vadd.f32 %v586_v18, %v229_v19 }
 0x12d   :  { %v241_v22 = vadd.f32 %v662_v20, %v586_v18  ;;  %v232_v23 = vpop.f32.mrb[3].mxu0 }
 0x12e   :  { %v233_v25 = vadd.f32 %v586_v18, %v232_v23 }
 0x12f   :  { %v309_v26 = vpack.c.bf16 %v241_v22, %v238_v21 }
 0x130   :  { %v308_v27 = vpack.c.bf16 %v233_v25, %v230_v24 }
 0x132   :  { %v665_v28 = vpop.f32.mrb[4].mxu0  ;;  %675 = vmatprep.subr.bf16.mxu1 %v308_v27 }
 0x133   :  { %v245_v29 = vpop.f32.mrb[5].mxu0  ;;  %676 = vmatpush3.bf16.msra.mxu1 %v308_v27  ;;  %v254_v31 = vadd.f32 %v665_v28, %v586_v18 }
 0x134   :  { %v666_v30 = vpop.f32.mrb[6].mxu0  ;;  %677 = vmatprep.subr.bf16.mxu1 %v309_v26  ;;  %v246_v34 = vadd.f32 %v586_v18, %v245_v29 }
 0x135   :  { %v257_v32 = vadd.f32 %v666_v30, %v586_v18  ;;  %v248_v33 = vpop.f32.mrb[7].mxu0 }
 0x136   :  { %v249_v35 = vadd.f32 %v586_v18, %v248_v33 }
 0x137   :  { %v311_v36 = vpack.c.bf16 %v257_v32, %v254_v31  ;;  %678 = vmatpush3.bf16.msra.mxu1 %v309_v26 }
 0x138   :  { %v310_v37 = vpack.c.bf16 %v249_v35, %v246_v34 }
 0x13a   :  { %v669_v38 = vpop.f32.mrb[8].mxu0  ;;  %679 = vmatprep.subr.bf16.mxu1 %v310_v37 }
 0x13b   :  { %v261_v39 = vpop.f32.mrb[9].mxu0  ;;  %680 = vmatpush3.bf16.msra.mxu1 %v310_v37  ;;  %v270_v41 = vadd.f32 %v669_v38, %v586_v18 }
 0x13c   :  { %v670_v40 = vpop.f32.mrb[10].mxu0  ;;  %681 = vmatprep.subr.bf16.mxu1 %v311_v36  ;;  %v262_v44 = vadd.f32 %v586_v18, %v261_v39 }
 0x13d   :  { %v273_v42 = vadd.f32 %v670_v40, %v586_v18  ;;  %v264_v43 = vpop.f32.mrb[11].mxu0 }
 0x13e   :  { %v265_v45 = vadd.f32 %v586_v18, %v264_v43 }
 0x13f   :  { %v313_v46 = vpack.c.bf16 %v273_v42, %v270_v41  ;;  %682 = vmatpush3.bf16.msra.mxu1 %v311_v36 }
 0x140   :  { %v312_v47 = vpack.c.bf16 %v265_v45, %v262_v44 }
 0x142   :  { %v673_v48 = vpop.f32.mrb[12].mxu0  ;;  %683 = vmatprep.subr.bf16.mxu1 %v312_v47 }
 0x143   :  { %v277_v49 = vpop.f32.mrb[13].mxu0  ;;  %684 = vmatpush3.bf16.msra.mxu1 %v312_v47  ;;  %v286_v51 = vadd.f32 %v673_v48, %v586_v18 }
 0x144   :  { %v674_v50 = vpop.f32.mrb[14].mxu0  ;;  %685 = vmatprep.subr.bf16.mxu1 %v313_v46  ;;  %v278_v54 = vadd.f32 %v586_v18, %v277_v49 }
 0x145   :  { %v289_v52 = vadd.f32 %v674_v50, %v586_v18  ;;  %v280_v53 = vpop.f32.mrb[15].mxu0 }
 0x146   :  { %v281_v55 = vadd.f32 %v586_v18, %v280_v53 }
 0x147   :  { %v315_v56 = vpack.c.bf16 %v289_v52, %v286_v51  ;;  %686 = vmatpush3.bf16.msra.mxu1 %v313_v46 }
 0x148   :  { %v314_v57 = vpack.c.bf16 %v281_v55, %v278_v54 }
 0x14a   :  { %687 = vmatprep.subr.bf16.mxu1 %v314_v57 }
 0x14b   :  { %688 = vmatpush3.bf16.msra.mxu1 %v314_v57 }
 0x14c   :  { %689 = vmatprep.subr.bf16.mxu1 %v315_v56 }
 0x14f   :  { %690 = vmatpush3.bf16.msra.mxu1 %v315_v56 }
 0x152   :  { %692 = vmatmul.mubr.bf16.vlgmr.msra.gmra.mrb[0].mxu1 %v732_v58 }
 0x153   :  { %695 = vmatprep.mubr.bf16.mxu1 %v733_v59 }
 0x15a   :  { %696 = vmatmul.mubr.bf16.gmra.mrb[4].mxu1 %v734_v60 }
 0x15b   :  { %699 = vmatprep.mubr.bf16.mxu1 %v735_v61 }
 0x162   :  { %700 = vmatmul.mubr.bf16.gmra.mrb[8].mxu1 %v736_v62 }
 0x163   :  { %703 = vmatprep.mubr.bf16.mxu1 %v737_v63 }
 0x16a   :  { %704 = vmatmul.mubr.bf16.gmra.mrb[12].mxu1 %v738_v0 }
 0x225   :  { %v693_v1 = vpop.f32.mrb[0].mxu1 }
 0x226   :  { %554 = vst [vmem:[#allocation9 + $0x10] sm:$0xff] %v693_v1  ;;  %v398_v2 = vpop.f32.mrb[1].mxu1 }
 0x227   :  { %552 = vst [vmem:[#allocation9] sm:$0xff] %v398_v2  ;;  %v694_v3 = vpop.f32.mrb[2].mxu1 }
 0x228   :  { %555 = vst [vmem:[#allocation9 + $0x18] sm:$0xff] %v694_v3  ;;  %v401_v4 = vpop.f32.mrb[3].mxu1 }
 0x229   :  { %553 = vst [vmem:[#allocation9 + $0x8] sm:$0xff] %v401_v4 }
 0x22d   :  { %v697_v5 = vpop.f32.mrb[4].mxu1 }
 0x22e   :  { %558 = vst [vmem:[#allocation9 + $0x30] sm:$0xff] %v697_v5  ;;  %v414_v6 = vpop.f32.mrb[5].mxu1 }
 0x22f   :  { %556 = vst [vmem:[#allocation9 + $0x20] sm:$0xff] %v414_v6  ;;  %v698_v7 = vpop.f32.mrb[6].mxu1 }
 0x230   :  { %559 = vst [vmem:[#allocation9 + $0x38] sm:$0xff] %v698_v7  ;;  %v417_v8 = vpop.f32.mrb[7].mxu1 }
 0x231   :  { %557 = vst [vmem:[#allocation9 + $0x28] sm:$0xff] %v417_v8 }
 0x235   :  { %v701_v9 = vpop.f32.mrb[8].mxu1 }
 0x236   :  { %562 = vst [vmem:[#allocation9 + $0x50] sm:$0xff] %v701_v9  ;;  %v430_v10 = vpop.f32.mrb[9].mxu1 }
 0x237   :  { %560 = vst [vmem:[#allocation9 + $0x40] sm:$0xff] %v430_v10  ;;  %v702_v11 = vpop.f32.mrb[10].mxu1 }
 0x238   :  { %563 = vst [vmem:[#allocation9 + $0x58] sm:$0xff] %v702_v11  ;;  %v433_v12 = vpop.f32.mrb[11].mxu1 }
 0x239   :  { %561 = vst [vmem:[#allocation9 + $0x48] sm:$0xff] %v433_v12 }
 0x23d   :  { %v705_v13 = vpop.f32.mrb[12].mxu1 }
 0x23e   :  { %566 = vst [vmem:[#allocation9 + $0x70] sm:$0xff] %v705_v13  ;;  %v446_v14 = vpop.f32.mrb[13].mxu1 }
 0x23f   :  { %564 = vst [vmem:[#allocation9 + $0x60] sm:$0xff] %v446_v14  ;;  %v706_v15 = vpop.f32.mrb[14].mxu1 }
 0x240   :  { %567 = vst [vmem:[#allocation9 + $0x78] sm:$0xff] %v706_v15  ;;  %v449_v16 = vpop.f32.mrb[15].mxu1 }
 0x241   :  { %565 = vst [vmem:[#allocation9 + $0x68] sm:$0xff] %v449_v16 }
 0x242   :  { %816 = shalt.err (!%p813_p0)
}
 0x243   :  { %s817_s30 = scalar_lea.hbm %s937_s4, 2048 }
 0x244   :  { %p818_p1 = scmp.ne.s32.totalorder %s937_s4, %s817_s30  ;;  %p821_p2 = scmp.lt.u32.totalorder %s817_s30, %s937_s4 }
 0x246   :  { %p823_p3 = pnand %p821_p2, %p818_p1 }
 0x248   :  { %826 = shalt.err (!%p823_p3)
}
 0x249   :  { %s839_s9 = smov 128   ;;  %s840_s10 = smov 8  }
 0x24a   :  { %579 = dma.vmem_to_hbm [thread:$0]  %s574_s26, 2048, %s937_s4, [#allocation5], %s839_s9, %s839_s9, %s840_s10  }
 0x24b   :  { %831 = dma.done.wait [#allocation5], 2048  }
 0x24c   :  { %832 = vsyncadd [#allocation5], 4294965248 }
 0x24d   :  { %583 = vsyncpa [#allocation4], 1 }
 0x24e   :  { %584 = vsyncpa [#allocation7], 1 }
 0x24f   :  { %585 = vsyncpa [#allocation5], 1 }

</bundles_post_ra>
